<compile_context>
chip_gen: v7x
topology: tpu7x:2x2x1
jax: 0.10.0
libtpu: 0.0.40
codegen_flags: <defaults>
</compile_context>

<pallas_src>
import math

import jax
import jax.numpy as jnp
from jax.experimental import pallas as pl
from jax.experimental.pallas import tpu as pltpu


def _nav_kernel(
    x_ref,
    w1_ref, b1_ref, w2_ref, b2_ref, w3_ref, b3_ref,          # shared trunk (packed)
    hw1_ref, hb1_ref, hw2_ref, hb2_ref, hw3_ref, hb3_ref,    # fused heads (packed)
    out_ref,
):
    relu = lambda v: jnp.maximum(v, 0.0)

    def dense(h, w_ref, b_ref):
        # bf16 MXU inputs, f32 accumulation; bias-add stays f32.
        return jnp.dot(h.astype(jnp.bfloat16), w_ref[...],
                       preferred_element_type=jnp.float32) + b_ref[...]

    # Shared feature trunk (ReLU after each layer).
    f = relu(dense(x_ref[...], w1_ref, b1_ref))
    f = relu(dense(f, w2_ref, b2_ref))
    f = relu(dense(f, w3_ref, b3_ref))

    # Fused heads (block-diagonal packing keeps linear/angular paths independent
    # because ReLU is elementwise).
    h = relu(dense(f, hw1_ref, hb1_ref))
    h = relu(dense(h, hw2_ref, hb2_ref))
    y = dense(h, hw3_ref, hb3_ref)           # (TB, pack*2): [L, dtheta] per packed row

    # Even lanes -> sigmoid (L), odd lanes -> tanh (dtheta).
    # Use a single tanh for both: sigmoid(y) = 0.5 * tanh(y/2) + 0.5.
    lane = jax.lax.broadcasted_iota(jnp.int32, y.shape, dimension=1)
    is_lin = (lane % 2) == 0
    t = jnp.tanh(jnp.where(is_lin, 0.5 * y, y))
    out_ref[...] = jnp.where(is_lin, 0.5 * t + 0.5, t)


def _round_up(n, m):
    return (n + m - 1) // m * m


def _block_diag(w, p):
    """blockdiag(w, ..., w) with p copies; (in, out) -> (p*in, p*out)."""
    if p == 1:
        return w
    fin, fout = w.shape
    out = jnp.zeros((p * fin, p * fout), w.dtype)
    for i in range(p):
        out = out.at[i * fin:(i + 1) * fin, i * fout:(i + 1) * fout].set(w)
    return out


def _pack_heads(params):
    """Fuse linear + angular heads into one block-diagonal head (host-side)."""
    (lw1, lb1), (lw2, lb2), (lw3, lb3) = params[3:6]
    (aw1, ab1), (aw2, ab2), (aw3, ab3) = params[6:9]

    hw1 = jnp.concatenate([lw1, aw1], axis=1)                       # (64, 64)
    hb1 = jnp.concatenate([lb1, ab1], axis=0)                       # (64,)

    hw2 = jnp.zeros((64, 32), jnp.float32)
    hw2 = hw2.at[:32, :16].set(lw2).at[32:, 16:].set(aw2)           # (64, 32) block-diag
    hb2 = jnp.concatenate([lb2, ab2], axis=0)                       # (32,)

    hw3 = jnp.zeros((32, 2), jnp.float32)
    hw3 = hw3.at[:16, 0:1].set(lw3).at[16:, 1:2].set(aw3)           # (32, 2) block-diag
    hb3 = jnp.concatenate([lb3, ab3], axis=0)                       # (2,)

    return [(hw1, hb1), (hw2, hb2), (hw3, hb3)]


def _default_pack(requested=None):
    """pack=4 on 256-wide MXU chips (v6e/v7x), pack=2 on 128-wide (v5e/older)."""
    if requested is not None:
        return requested
    try:
        kind = jax.devices()[0].device_kind.lower()
    except Exception:
        return 2
    if any(t in kind for t in ("v2", "v3", "v4", "v5")):
        return 2
    return 4


def navigation_net_forward(x, params, *, pack=None, max_batch_tile=2048):
    """x: (B, 12) float32.  params: list of 9 (W, b), W stored (in, out)."""
    batch, feat = x.shape
    p = _default_pack(pack)

    # 1) pad batch to a multiple of the pack factor, then fold `p` batch rows
    #    into the lane dimension (row-major reshape is free).
    b_pk = _round_up(batch, p)
    if b_pk != batch:
        x = jnp.pad(x, ((0, b_pk - batch), (0, 0)))
    rows = b_pk // p
    xp = x.reshape(rows, p * feat).astype(jnp.float32)

    # 2) batch tile: multiple of 8 (f32 sublanes), and sized so the grid has
    #    >= 2 steps whenever possible (v7x megacore sharding), capped by
    #    max_batch_tile (per-tile VMEM is only a few MiB even at 2048).
    tb = min(max_batch_tile, _round_up(pl.cdiv(rows, 2), 8))
    rows_pad = _round_up(rows, tb)
    if rows_pad != rows:
        xp = jnp.pad(xp, ((0, rows_pad - rows), (0, 0)))
    grid = (rows_pad // tb,)

    # 3) weights: fuse heads, replicate block-diagonally for the batch pack,
    #    cast matmul operands to bf16 (biases stay f32, kept 2-D (1, out)).
    layers = list(params[:3]) + _pack_heads(params)

    flat_args = [xp]
    in_specs = [pl.BlockSpec((tb, p * feat), lambda i: (i, 0))]
    for w, b in layers:
        wp = _block_diag(w, p).astype(jnp.bfloat16)
        bp = jnp.tile(b, p).reshape(1, -1).astype(jnp.float32)
        flat_args += [wp, bp]
        in_specs += [
            pl.BlockSpec(wp.shape, lambda i: (0, 0)),   # VMEM-resident across steps
            pl.BlockSpec(bp.shape, lambda i: (0, 0)),
        ]

    out = pl.pallas_call(
        _nav_kernel,
        out_shape=jax.ShapeDtypeStruct((rows_pad, p * 2), jnp.float32),
        grid=grid,
        in_specs=in_specs,
        out_specs=pl.BlockSpec((tb, p * 2), lambda i: (i, 0)),
        compiler_params=pltpu.CompilerParams(
            dimension_semantics=("parallel",),
            vmem_limit_bytes=32 * 1024 * 1024,
        ),
    )(*flat_args)

    # (rows_pad, p*2) -> (rows_pad*p, 2); packed order preserves batch order.
    return out.reshape(rows_pad * p, 2)[:batch]


def init_params(key):
    """Deterministic PyTorch-style init: U(-1/sqrt(fan_in), 1/sqrt(fan_in))."""
    layer_dims = [
        (12, 16), (16, 32), (32, 64),   # shared features
        (64, 32), (32, 16), (16, 1),    # linear head
        (64, 32), (32, 16), (16, 1),    # angular head
    ]
    params = []
    for fan_in, fan_out in layer_dims:
        key, kw, kb = jax.random.split(key, 3)
        bound = 1.0 / math.sqrt(fan_in)
        w = jax.random.uniform(kw, (fan_in, fan_out), jnp.float32, -bound, bound)
        b = jax.random.uniform(kb, (fan_out,), jnp.float32, -bound, bound)
        params.append((w, b))
    return params


def reference_forward(x, params):
    """Pure-JAX reference mirroring the PyTorch forward (unfused, f32)."""
    relu = lambda v: jnp.maximum(v, 0.0)

    def dense(h, wb, act):
        w, b = wb
        return act(h @ w + b)

    f = dense(dense(dense(x, params[0], relu), params[1], relu), params[2], relu)
    l = dense(dense(dense(f, params[3], relu), params[4], relu), params[5], jax.nn.sigmoid)
    a = dense(dense(dense(f, params[6], relu), params[7], relu), params[8], jnp.tanh)
    return jnp.stack([l[:, 0], a[:, 0]], axis=-1)


if __name__ == "__main__":
    key = jax.random.PRNGKey(0)
    key, kx = jax.random.split(key)
    params = init_params(key)

    # bf16 matmul inputs with f32 accumulation -> loosened tolerance vs. f32 ref.
    ATOL, RTOL = 2e-2, 2e-2

    # Small test (single grid step, chip-default pack factor).
    batch = 8
    x = jax.random.normal(kx, (batch, 12), dtype=jnp.float32)
    out = jax.block_until_ready(navigation_net_forward(x, params))
    ref = reference_forward(x, params)
    assert out.shape == (batch, 2), out.shape
    assert jnp.allclose(out, ref, atol=ATOL, rtol=RTOL), (out, ref)

    # Larger batch, forced pack=2, multi-step grid + padding path.
    key, kx2 = jax.random.split(key)
    batch2 = 600
    x2 = jax.random.normal(kx2, (batch2, 12), dtype=jnp.float32)
    out2 = jax.block_until_ready(
        navigation_net_forward(x2, params, pack=2, max_batch_tile=256))
    ref2 = reference_forward(x2, params)
    assert out2.shape == (batch2, 2), out2.shape
    assert jnp.allclose(out2, ref2, atol=ATOL, rtol=RTOL)

    # Forced pack=4 with a batch that is NOT a multiple of the pack factor.
    key, kx3 = jax.random.split(key)
    batch3 = 603
    x3 = jax.random.normal(kx3, (batch3, 12), dtype=jnp.float32)
    out3 = jax.block_until_ready(
        navigation_net_forward(x3, params, pack=4, max_batch_tile=256))
    ref3 = reference_forward(x3, params)
    assert out3.shape == (batch3, 2), out3.shape
    assert jnp.allclose(out3, ref3, atol=ATOL, rtol=RTOL)

    print("KERNEL_OK")
</pallas_src>

<mosaic_0001>
module attributes {stable_mosaic.version = 11 : i64} {
  func.func @_nav_kernel(%arg0: i32, %arg1: memref<8x48xf32, #tpu.memory_space<vmem>>, %arg2: memref<48x64xbf16, #tpu.memory_space<vmem>>, %arg3: memref<1x64xf32, #tpu.memory_space<vmem>>, %arg4: memref<64x128xbf16, #tpu.memory_space<vmem>>, %arg5: memref<1x128xf32, #tpu.memory_space<vmem>>, %arg6: memref<128x256xbf16, #tpu.memory_space<vmem>>, %arg7: memref<1x256xf32, #tpu.memory_space<vmem>>, %arg8: memref<256x256xbf16, #tpu.memory_space<vmem>>, %arg9: memref<1x256xf32, #tpu.memory_space<vmem>>, %arg10: memref<256x128xbf16, #tpu.memory_space<vmem>>, %arg11: memref<1x128xf32, #tpu.memory_space<vmem>>, %arg12: memref<128x8xbf16, #tpu.memory_space<vmem>>, %arg13: memref<1x8xf32, #tpu.memory_space<vmem>>, %arg14: memref<8x8xf32, #tpu.memory_space<vmem>>) attributes {dimension_semantics = [#tpu.dimension_semantics<parallel>], iteration_bounds = array<i64: 1>, scalar_prefetch = 0 : i64, scratch_operands = 0 : i64, tpu.core_type = #tpu.core_type<tc>, window_params = [{transform_indices = @transform_0, window_bounds = array<i64: 8, 48>}, {pipeline_mode = #tpu.pipeline_mode<synchronous>, transform_indices = @transform_1, window_bounds = array<i64: 48, 64>}, {pipeline_mode = #tpu.pipeline_mode<synchronous>, transform_indices = @transform_2, window_bounds = array<i64: 1, 64>}, {pipeline_mode = #tpu.pipeline_mode<synchronous>, transform_indices = @transform_3, window_bounds = array<i64: 64, 128>}, {pipeline_mode = #tpu.pipeline_mode<synchronous>, transform_indices = @transform_4, window_bounds = array<i64: 1, 128>}, {pipeline_mode = #tpu.pipeline_mode<synchronous>, transform_indices = @transform_5, window_bounds = array<i64: 128, 256>}, {pipeline_mode = #tpu.pipeline_mode<synchronous>, transform_indices = @transform_6, window_bounds = array<i64: 1, 256>}, {pipeline_mode = #tpu.pipeline_mode<synchronous>, transform_indices = @transform_7, window_bounds = array<i64: 256, 256>}, {pipeline_mode = #tpu.pipeline_mode<synchronous>, transform_indices = @transform_8, window_bounds = array<i64: 1, 256>}, {pipeline_mode = #tpu.pipeline_mode<synchronous>, transform_indices = @transform_9, window_bounds = array<i64: 256, 128>}, {pipeline_mode = #tpu.pipeline_mode<synchronous>, transform_indices = @transform_10, window_bounds = array<i64: 1, 128>}, {pipeline_mode = #tpu.pipeline_mode<synchronous>, transform_indices = @transform_11, window_bounds = array<i64: 128, 8>}, {pipeline_mode = #tpu.pipeline_mode<synchronous>, transform_indices = @transform_12, window_bounds = array<i64: 1, 8>}, {transform_indices = @transform_13, window_bounds = array<i64: 8, 8>}]} {
    %c0 = arith.constant 0 : index
    %c0_0 = arith.constant 0 : index
    %0 = vector.load %arg1[%c0, %c0_0] : memref<8x48xf32, #tpu.memory_space<vmem>>, vector<8x48xf32>
    %1 = arith.truncf %0 : vector<8x48xf32> to vector<8x48xbf16>
    %c0_1 = arith.constant 0 : index
    %c0_2 = arith.constant 0 : index
    %2 = vector.load %arg2[%c0_1, %c0_2] : memref<48x64xbf16, #tpu.memory_space<vmem>>, vector<48x64xbf16>
    %cst = arith.constant dense<0.000000e+00> : vector<8x64xf32>
    %3 = tpu.matmul %1, %2, %cst {dimension_numbers = #tpu.dot_dimension_numbers<[1], [0], [0], [1], [0, 0, 1, 1], [], []>} : vector<8x48xbf16>, vector<48x64xbf16>, vector<8x64xf32> -> vector<8x64xf32>
    %c0_3 = arith.constant 0 : index
    %c0_4 = arith.constant 0 : index
    %4 = vector.load %arg3[%c0_3, %c0_4] : memref<1x64xf32, #tpu.memory_space<vmem>>, vector<1x64xf32>
    %5 = vector.broadcast %4 : vector<1x64xf32> to vector<8x64xf32>
    %6 = arith.addf %3, %5 : vector<8x64xf32>
    %cst_5 = arith.constant 0.000000e+00 : f32
    %7 = vector.broadcast %cst_5 : f32 to vector<8x64xf32>
    %8 = arith.maximumf %6, %7 : vector<8x64xf32>
    %9 = arith.truncf %8 : vector<8x64xf32> to vector<8x64xbf16>
    %c0_6 = arith.constant 0 : index
    %c0_7 = arith.constant 0 : index
    %10 = vector.load %arg4[%c0_6, %c0_7] : memref<64x128xbf16, #tpu.memory_space<vmem>>, vector<64x128xbf16>
    %cst_8 = arith.constant dense<0.000000e+00> : vector<8x128xf32>
    %11 = tpu.matmul %9, %10, %cst_8 {dimension_numbers = #tpu.dot_dimension_numbers<[1], [0], [0], [1], [0, 0, 1, 1], [], []>} : vector<8x64xbf16>, vector<64x128xbf16>, vector<8x128xf32> -> vector<8x128xf32>
    %c0_9 = arith.constant 0 : index
    %c0_10 = arith.constant 0 : index
    %12 = vector.load %arg5[%c0_9, %c0_10] : memref<1x128xf32, #tpu.memory_space<vmem>>, vector<1x128xf32>
    %13 = vector.broadcast %12 : vector<1x128xf32> to vector<8x128xf32>
    %14 = arith.addf %11, %13 : vector<8x128xf32>
    %cst_11 = arith.constant 0.000000e+00 : f32
    %15 = vector.broadcast %cst_11 : f32 to vector<8x128xf32>
    %16 = arith.maximumf %14, %15 : vector<8x128xf32>
    %17 = arith.truncf %16 : vector<8x128xf32> to vector<8x128xbf16>
    %c0_12 = arith.constant 0 : index
    %c0_13 = arith.constant 0 : index
    %18 = vector.load %arg6[%c0_12, %c0_13] : memref<128x256xbf16, #tpu.memory_space<vmem>>, vector<128x256xbf16>
    %cst_14 = arith.constant dense<0.000000e+00> : vector<8x256xf32>
    %19 = tpu.matmul %17, %18, %cst_14 {dimension_numbers = #tpu.dot_dimension_numbers<[1], [0], [0], [1], [0, 0, 1, 1], [], []>} : vector<8x128xbf16>, vector<128x256xbf16>, vector<8x256xf32> -> vector<8x256xf32>
    %c0_15 = arith.constant 0 : index
    %c0_16 = arith.constant 0 : index
    %20 = vector.load %arg7[%c0_15, %c0_16] : memref<1x256xf32, #tpu.memory_space<vmem>>, vector<1x256xf32>
    %21 = vector.broadcast %20 : vector<1x256xf32> to vector<8x256xf32>
    %22 = arith.addf %19, %21 : vector<8x256xf32>
    %cst_17 = arith.constant 0.000000e+00 : f32
    %23 = vector.broadcast %cst_17 : f32 to vector<8x256xf32>
    %24 = arith.maximumf %22, %23 : vector<8x256xf32>
    %25 = arith.truncf %24 : vector<8x256xf32> to vector<8x256xbf16>
    %c0_18 = arith.constant 0 : index
    %c0_19 = arith.constant 0 : index
    %26 = vector.load %arg8[%c0_18, %c0_19] : memref<256x256xbf16, #tpu.memory_space<vmem>>, vector<256x256xbf16>
    %cst_20 = arith.constant dense<0.000000e+00> : vector<8x256xf32>
    %27 = tpu.matmul %25, %26, %cst_20 {dimension_numbers = #tpu.dot_dimension_numbers<[1], [0], [0], [1], [0, 0, 1, 1], [], []>} : vector<8x256xbf16>, vector<256x256xbf16>, vector<8x256xf32> -> vector<8x256xf32>
    %c0_21 = arith.constant 0 : index
    %c0_22 = arith.constant 0 : index
    %28 = vector.load %arg9[%c0_21, %c0_22] : memref<1x256xf32, #tpu.memory_space<vmem>>, vector<1x256xf32>
    %29 = vector.broadcast %28 : vector<1x256xf32> to vector<8x256xf32>
    %30 = arith.addf %27, %29 : vector<8x256xf32>
    %cst_23 = arith.constant 0.000000e+00 : f32
    %31 = vector.broadcast %cst_23 : f32 to vector<8x256xf32>
    %32 = arith.maximumf %30, %31 : vector<8x256xf32>
    %33 = arith.truncf %32 : vector<8x256xf32> to vector<8x256xbf16>
    %c0_24 = arith.constant 0 : index
    %c0_25 = arith.constant 0 : index
    %34 = vector.load %arg10[%c0_24, %c0_25] : memref<256x128xbf16, #tpu.memory_space<vmem>>, vector<256x128xbf16>
    %cst_26 = arith.constant dense<0.000000e+00> : vector<8x128xf32>
    %35 = tpu.matmul %33, %34, %cst_26 {dimension_numbers = #tpu.dot_dimension_numbers<[1], [0], [0], [1], [0, 0, 1, 1], [], []>} : vector<8x256xbf16>, vector<256x128xbf16>, vector<8x128xf32> -> vector<8x128xf32>
    %c0_27 = arith.constant 0 : index
    %c0_28 = arith.constant 0 : index
    %36 = vector.load %arg11[%c0_27, %c0_28] : memref<1x128xf32, #tpu.memory_space<vmem>>, vector<1x128xf32>
    %37 = vector.broadcast %36 : vector<1x128xf32> to vector<8x128xf32>
    %38 = arith.addf %35, %37 : vector<8x128xf32>
    %cst_29 = arith.constant 0.000000e+00 : f32
    %39 = vector.broadcast %cst_29 : f32 to vector<8x128xf32>
    %40 = arith.maximumf %38, %39 : vector<8x128xf32>
    %41 = arith.truncf %40 : vector<8x128xf32> to vector<8x128xbf16>
    %c0_30 = arith.constant 0 : index
    %c0_31 = arith.constant 0 : index
    %42 = vector.load %arg12[%c0_30, %c0_31] : memref<128x8xbf16, #tpu.memory_space<vmem>>, vector<128x8xbf16>
    %cst_32 = arith.constant dense<0.000000e+00> : vector<8x8xf32>
    %43 = tpu.matmul %41, %42, %cst_32 {dimension_numbers = #tpu.dot_dimension_numbers<[1], [0], [0], [1], [0, 0, 1, 1], [], []>} : vector<8x128xbf16>, vector<128x8xbf16>, vector<8x8xf32> -> vector<8x8xf32>
    %c0_33 = arith.constant 0 : index
    %c0_34 = arith.constant 0 : index
    %44 = vector.load %arg13[%c0_33, %c0_34] : memref<1x8xf32, #tpu.memory_space<vmem>>, vector<1x8xf32>
    %45 = vector.broadcast %44 : vector<1x8xf32> to vector<8x8xf32>
    %46 = arith.addf %43, %45 : vector<8x8xf32>
    %47 = tpu.iota {dimensions = array<i32: 1>} : vector<8x8xi32>
    %c2_i32 = arith.constant 2 : i32
    %c0_i32 = arith.constant 0 : i32
    %48 = arith.cmpi eq, %c2_i32, %c0_i32 : i32
    %c1_i32 = arith.constant 1 : i32
    %49 = arith.select %48, %c1_i32, %c2_i32 : i32
    %50 = vector.broadcast %49 : i32 to vector<8x8xi32>
    %51 = arith.remsi %47, %50 : vector<8x8xi32>
    %c0_i32_35 = arith.constant 0 : i32
    %52 = vector.broadcast %c0_i32_35 : i32 to vector<8x8xi32>
    %53 = arith.cmpi ne, %51, %52 : vector<8x8xi32>
    %c0_i32_36 = arith.constant 0 : i32
    %54 = vector.broadcast %c0_i32_36 : i32 to vector<8x8xi32>
    %55 = arith.cmpi slt, %51, %54 : vector<8x8xi32>
    %c0_i32_37 = arith.constant 0 : i32
    %56 = arith.cmpi slt, %49, %c0_i32_37 : i32
    %57 = vector.broadcast %56 : i1 to vector<8x8xi1>
    %58 = vector.broadcast %57 : vector<8x8xi1> to vector<8x8xi1>
    %59 = arith.xori %55, %58 : vector<8x8xi1>
    %60 = arith.andi %59, %53 : vector<8x8xi1>
    %61 = vector.broadcast %49 : i32 to vector<8x8xi32>
    %62 = arith.addi %51, %61 : vector<8x8xi32>
    %63 = arith.select %60, %62, %51 : vector<8x8xi1>, vector<8x8xi32>
    %c0_i32_38 = arith.constant 0 : i32
    %64 = vector.broadcast %c0_i32_38 : i32 to vector<8x8xi32>
    %65 = arith.cmpi eq, %63, %64 : vector<8x8xi32>
    %cst_39 = arith.constant 5.000000e-01 : f32
    %66 = vector.broadcast %cst_39 : f32 to vector<8x8xf32>
    %67 = arith.mulf %66, %46 : vector<8x8xf32>
    %68 = arith.select %65, %67, %46 : vector<8x8xi1>, vector<8x8xf32>
    %69 = math.tanh %68 : vector<8x8xf32>
    %cst_40 = arith.constant 5.000000e-01 : f32
    %70 = vector.broadcast %cst_40 : f32 to vector<8x8xf32>
    %71 = arith.mulf %70, %69 : vector<8x8xf32>
    %cst_41 = arith.constant 5.000000e-01 : f32
    %72 = vector.broadcast %cst_41 : f32 to vector<8x8xf32>
    %73 = arith.addf %71, %72 : vector<8x8xf32>
    %74 = arith.select %65, %73, %69 : vector<8x8xi1>, vector<8x8xf32>
    %c0_42 = arith.constant 0 : index
    %c0_43 = arith.constant 0 : index
    %75 = vector.load %arg14[%c0_42, %c0_43] : memref<8x8xf32, #tpu.memory_space<vmem>>, vector<8x8xf32>
    tpu.vector_store %arg14[%c0_42, %c0_43], %74 {strides = array<i32>} : memref<8x8xf32, #tpu.memory_space<vmem>>, vector<8x8xf32>,
    return
  }
  func.func @transform_0(%arg0: i32) -> (i32, i32) {
    %c0_i32 = arith.constant 0 : i32
    %c0_i32_0 = arith.constant 0 : i32
    return %arg0, %c0_i32 : i32, i32
  }
  func.func @transform_1(%arg0: i32) -> (i32, i32) {
    %c0_i32 = arith.constant 0 : i32
    %c0_i32_0 = arith.constant 0 : i32
    %c0_i32_1 = arith.constant 0 : i32
    return %c0_i32, %c0_i32_0 : i32, i32
  }
  func.func @transform_2(%arg0: i32) -> (i32, i32) {
    %c0_i32 = arith.constant 0 : i32
    %c0_i32_0 = arith.constant 0 : i32
    %c0_i32_1 = arith.constant 0 : i32
    return %c0_i32, %c0_i32_0 : i32, i32
  }
  func.func @transform_3(%arg0: i32) -> (i32, i32) {
    %c0_i32 = arith.constant 0 : i32
    %c0_i32_0 = arith.constant 0 : i32
    %c0_i32_1 = arith.constant 0 : i32
    return %c0_i32, %c0_i32_0 : i32, i32
  }
  func.func @transform_4(%arg0: i32) -> (i32, i32) {
    %c0_i32 = arith.constant 0 : i32
    %c0_i32_0 = arith.constant 0 : i32
    %c0_i32_1 = arith.constant 0 : i32
    return %c0_i32, %c0_i32_0 : i32, i32
  }
  func.func @transform_5(%arg0: i32) -> (i32, i32) {
    %c0_i32 = arith.constant 0 : i32
    %c0_i32_0 = arith.constant 0 : i32
    %c0_i32_1 = arith.constant 0 : i32
    return %c0_i32, %c0_i32_0 : i32, i32
  }
  func.func @transform_6(%arg0: i32) -> (i32, i32) {
    %c0_i32 = arith.constant 0 : i32
    %c0_i32_0 = arith.constant 0 : i32
    %c0_i32_1 = arith.constant 0 : i32
    return %c0_i32, %c0_i32_0 : i32, i32
  }
  func.func @transform_7(%arg0: i32) -> (i32, i32) {
    %c0_i32 = arith.constant 0 : i32
    %c0_i32_0 = arith.constant 0 : i32
    %c0_i32_1 = arith.constant 0 : i32
    return %c0_i32, %c0_i32_0 : i32, i32
  }
  func.func @transform_8(%arg0: i32) -> (i32, i32) {
    %c0_i32 = arith.constant 0 : i32
    %c0_i32_0 = arith.constant 0 : i32
    %c0_i32_1 = arith.constant 0 : i32
    return %c0_i32, %c0_i32_0 : i32, i32
  }
  func.func @transform_9(%arg0: i32) -> (i32, i32) {
    %c0_i32 = arith.constant 0 : i32
    %c0_i32_0 = arith.constant 0 : i32
    %c0_i32_1 = arith.constant 0 : i32
    return %c0_i32, %c0_i32_0 : i32, i32
  }
  func.func @transform_10(%arg0: i32) -> (i32, i32) {
    %c0_i32 = arith.constant 0 : i32
    %c0_i32_0 = arith.constant 0 : i32
    %c0_i32_1 = arith.constant 0 : i32
    return %c0_i32, %c0_i32_0 : i32, i32
  }
  func.func @transform_11(%arg0: i32) -> (i32, i32) {
    %c0_i32 = arith.constant 0 : i32
    %c0_i32_0 = arith.constant 0 : i32
    %c0_i32_1 = arith.constant 0 : i32
    return %c0_i32, %c0_i32_0 : i32, i32
  }
  func.func @transform_12(%arg0: i32) -> (i32, i32) {
    %c0_i32 = arith.constant 0 : i32
    %c0_i32_0 = arith.constant 0 : i32
    %c0_i32_1 = arith.constant 0 : i32
    return %c0_i32, %c0_i32_0 : i32, i32
  }
  func.func @transform_13(%arg0: i32) -> (i32, i32) {
    %c0_i32 = arith.constant 0 : i32
    %c0_i32_0 = arith.constant 0 : i32
    return %arg0, %c0_i32 : i32, i32
  }
}

</mosaic_0001>

<bundles_post_ra>
// kernel: tpu_custom_call.1
= control target key start
LH: loop header
LB: loop body
LE: loop exit
PB: predicated region body
PF: predicated region fallthrough
CT: control target
= control target key end

     0   :  { %18 = vsyncpa [#allocation3], 0  ;;  %s1582_s0 = inlined_call_operand.vmem [shape: f32[8,48], index: 0, kind: input, shape index: {}]   ;;  %s1583_s1 = inlined_call_operand.vmem [shape: bf16[48,64], index: 1, kind: input, shape index: {}]   ;;  %s1584_s2 = inlined_call_operand.vmem [shape: f32[1,64], index: 2, kind: input, shape index: {}]   ;;  %s1585_s3 = inlined_call_operand.vmem [shape: bf16[64,128], index: 3, kind: input, shape index: {}]   ;;  %s1586_s4 = inlined_call_operand.vmem [shape: f32[1,128], index: 4, kind: input, shape index: {}]   ;;  %s1587_s5 = inlined_call_operand.hbm [shape: bf16[128,256], index: 5, kind: input, shape index: {}]   ;;  %s1588_s6 = inlined_call_operand.vmem [shape: f32[1,256], index: 6, kind: input, shape index: {}]   ;;  %s1589_s7 = inlined_call_operand.hbm [shape: bf16[256,256], index: 7, kind: input, shape index: {}]   ;;  %s1590_s8 = inlined_call_operand.vmem [shape: f32[1,256], index: 8, kind: input, shape index: {}]   ;;  %s1591_s9 = inlined_call_operand.hbm [shape: bf16[256,128], index: 9, kind: input, shape index: {}]   ;;  %s1592_s10 = inlined_call_operand.vmem [shape: f32[1,128], index: 10, kind: input, shape index: {}]   ;;  %s1593_s11 = inlined_call_operand.vmem [shape: bf16[128,8], index: 11, kind: input, shape index: {}]   ;;  %s1594_s12 = inlined_call_operand.vmem [shape: f32[1,8], index: 12, kind: input, shape index: {}]   ;;  %s1595_s13 = inlined_call_operand.hbm [shape: f32[8,8], index: 13, kind: output, shape index: {}]  }
   0x1   :  { %19 = vsyncpa [#allocation6], 0 }
   0x2   :  { %20 = vsyncpa [#allocation4], 0  ;;  %s1357_s25 = smov [#allocation5]   ;;  %s1358_s27 = smov [#allocation2]  }
   0x3   :  { %s50_s26 = sshll.u32 %s1357_s25, 4  ;;  %s36_s28 = sshll.u32 %s1358_s27, 4  ;;  %s51_s26 = int_to_ptr.vmem [resolvable:$true] %s50_s26  ;;  %s1438_s28 = int_to_ptr.vmem [resolvable:$true] %s36_s28 }
   0x4   :  { %s1263_s14 = scalar_lea.hbm %s1589_s7, 4096 }
   0x5   :  { %p1264_p0 = scmp.ne.s32.totalorder %s1589_s7, %s1263_s14  ;;  %p1267_p1 = scmp.lt.u32.totalorder %s1263_s14, %s1589_s7 }
   0x7   :  { %p1269_p2 = pnand %p1267_p1, %p1264_p0 }
   0x9   :  { %1272 = shalt.err (!%p1269_p2)
}
   0xa   :  { %s1273_s19 = scalar_lea.vmem %s51_s26, 4096  ;;  %p1278_p4 = scmp.lt.s32.totalorder %s51_s26, %s51_s26 }
   0xb   :  { %p1274_p3 = scmp.ne.s32.totalorder %s51_s26, %s1273_s19  ;;  %p1279_p5 = scmp.lt.s32.totalorder %s1273_s19, %s1273_s19 }
   0xd   :  { %p1280_p6 = por %p1279_p5, %p1278_p4 }
   0xf   :  { %p1281_p7 = pnand %p1280_p6, %p1274_p3 }
  0x11   :  { %1284 = shalt.err (!%p1281_p7)
}
  0x12   :  { %s1359_s20 = smov 128   ;;  %s1360_s21 = smov 8  }
  0x13   :  { %56 = dma.hbm_to_vmem [thread:$0]  %s1589_s7, 4096, %s51_s26, [#allocation6], %s1359_s20, %s1359_s20, %s1360_s21  }
  0x14   :  { %s1285_s27 = scalar_lea.hbm %s1587_s5, 2048 }
  0x15   :  { %p1286_p8 = scmp.ne.s32.totalorder %s1587_s5, %s1285_s27  ;;  %p1289_p9 = scmp.lt.u32.totalorder %s1285_s27, %s1587_s5 }
  0x17   :  { %p1291_p10 = pnand %p1289_p9, %p1286_p8 }
  0x19   :  { %1294 = shalt.err (!%p1291_p10)
}
  0x1a   :  { %s1295_s16 = scalar_lea.vmem %s1438_s28, 2048  ;;  %p1300_p12 = scmp.lt.s32.totalorder %s1438_s28, %s1438_s28 }
  0x1b   :  { %p1296_p11 = scmp.ne.s32.totalorder %s1438_s28, %s1295_s16  ;;  %p1301_p13 = scmp.lt.s32.totalorder %s1295_s16, %s1295_s16 }
  0x1d   :  { %p1302_p0 = por %p1301_p13, %p1300_p12 }
  0x1f   :  { %p1303_p1 = pnand %p1302_p0, %p1296_p11 }
  0x21   :  { %1306 = shalt.err (!%p1303_p1)
}
  0x22   :  { %42 = dma.hbm_to_vmem [thread:$0]  %s1587_s5, 2048, %s1438_s28, [#allocation3], %s1359_s20, %s1359_s20, %s1360_s21  }
  0x23   :  { %s1361_s17 = smov [#allocation7]   ;;  %s1307_s23 = scalar_lea.hbm %s1591_s9, 2048 }
  0x24   :  { %s64_s18 = sshll.u32 %s1361_s17, 4  ;;  %p1308_p2 = scmp.ne.s32.totalorder %s1591_s9, %s1307_s23  ;;  %s65_s18 = int_to_ptr.vmem [resolvable:$true] %s64_s18 }
  0x25   :  { %p1311_p3 = scmp.lt.u32.totalorder %s1307_s23, %s1591_s9 }
  0x27   :  { %p1313_p4 = pnand %p1311_p3, %p1308_p2 }
  0x29   :  { %1316 = shalt.err (!%p1313_p4)
}
  0x2a   :  { %s1317_s30 = scalar_lea.vmem %s65_s18, 2048  ;;  %p1322_p6 = scmp.lt.s32.totalorder %s65_s18, %s65_s18 }
  0x2b   :  { %p1318_p5 = scmp.ne.s32.totalorder %s65_s18, %s1317_s30  ;;  %p1323_p7 = scmp.lt.s32.totalorder %s1317_s30, %s1317_s30 }
  0x2d   :  { %p1324_p8 = por %p1323_p7, %p1322_p6 }
  0x2f   :  { %p1325_p9 = pnand %p1324_p8, %p1318_p5 }
  0x31   :  { %1328 = shalt.err (!%p1325_p9)
}
  0x32   :  { %s1362_s5 = smov 64   ;;  %s1363_s28 = smov 4  }
  0x33   :  { %70 = dma.hbm_to_vmem [thread:$0]  %s1591_s9, 2048, %s65_s18, [#allocation6], %s1362_s5, %s1362_s5, %s1363_s28  }
  0x34   :  { %1351 = dma.done.wait [#allocation3], 2048  }
  0x35   :  { %1352 = vsyncadd [#allocation3], 4294965248 }
  0x36   :  { %1353 = dma.done.wait [#allocation6], 6144  }
  0x37   :  { %1354 = vsyncadd [#allocation6], 4294961152  ;;  %v1364_v0 = vmov 0.0   ;;  %vm1365_vm0 = vmmov 0   ;;  %v1158_v1 = vld [vmem:[%s1583_s1] sm:$0xff]   ;;  %v1159_v2 = vld [vmem:[%s1583_s1 + $0x8] sm:$0xff]  }
  0x38   :  { %1105 = vmatprep.subr.bf16.mxu1 %v1364_v0  ;;  %1111 = vmatprep.mubr.msk.bf16.mxu1 %vm1365_vm0, %v1364_v0  ;;  %v1160_v3 = vld [vmem:[%s1583_s1 + $0x10] sm:$0xff]   ;;  %v87_v4 = vld [vmem:[%s1582_s0] sm:$0xff]  ;;  %vm120_vm1 = vcmask 392192   ;;  %v1162_v7 = vld [vmem:[%s1585_s3 + $0x8] sm:$0xff]   ;;  %vm205_vm2 = vcmask 523264   ;;  %v1366_v34 = vmov 0  }
  0x39   :  { %1106 = vmatpush3.bf16.msra.mxu1 %v1158_v1  ;;  %v1161_v5 = vld [vmem:[%s1585_s3] sm:$0xff]   ;;  %v88_v6 = vpack.c.bf16 %v87_v4, %v87_v4  ;;  %v1163_v8 = vld [vmem:[%s1585_s3 + $0x10] sm:$0xff]   ;;  %v1164_v9 = vld [vmem:[%s1585_s3 + $0x18] sm:$0xff]   ;;  %391 = vmatprep.mubr.bf16.mxu0 %v1366_v34  ;;  %vm962_vm4 = vcmask 64512  }
  0x3a   :  { %1107 = vmatprep.subr.bf16.mxu1 %v1364_v0  ;;  %v1165_v10 = vld [vmem:[#allocation2 + $0x4] ss:$8 sps:$4 sm:$0xff]   ;;  %v1167_v11 = vld [vmem:[#allocation2] ss:$8 sps:$4 sm:$0xff]   ;;  %v1168_v12 = vld [vmem:[#allocation2 + $0x14] ss:$8 sps:$4 sm:$0xff]  }
  0x3b   :  { %359 = vmatprep.subr.bf16.mxu0 %v1165_v10  ;;  %v1170_v13 = vld [vmem:[#allocation2 + $0x10] ss:$8 sps:$4 sm:$0xff]   ;;  %v1171_v14 = vld [vmem:[#allocation2 + $0x24] ss:$8 sps:$4 sm:$0xff]   ;;  %v1173_v15 = vld [vmem:[#allocation2 + $0x20] ss:$8 sps:$4 sm:$0xff]  }
  0x3c   :  { %360 = vmatpush1.bf16.msra.mxu0 %v1167_v11  ;;  %v1174_v16 = vld [vmem:[#allocation2 + $0x34] ss:$8 sps:$4 sm:$0xff]   ;;  %v1176_v17 = vld [vmem:[#allocation2 + $0x30] ss:$8 sps:$4 sm:$0xff]   ;;  %v1177_v18 = vld [vmem:[#allocation2 + $0x44] ss:$8 sps:$4 sm:$0xff]  }
  0x3d   :  { %1108 = vmatpush3.bf16.msra.mxu1 %v1159_v2  ;;  %361 = vmatprep.subr.bf16.mxu0 %v1168_v12  ;;  %v1179_v19 = vld [vmem:[#allocation2 + $0x40] ss:$8 sps:$4 sm:$0xff]   ;;  %v1180_v20 = vld [vmem:[#allocation2 + $0x54] ss:$8 sps:$4 sm:$0xff]   ;;  %v1182_v21 = vld [vmem:[#allocation2 + $0x50] ss:$8 sps:$4 sm:$0xff]  }
  0x3e   :  { %1109 = vmatprep.subr.bf16.mxu1 %v1364_v0  ;;  %v1183_v22 = vld [vmem:[#allocation2 + $0x64] ss:$8 sps:$4 sm:$0xff]   ;;  %v980_v23 = vld [vmem:[%s1584_s2] ss:$0 sm:$0xff]  ;;  %v1186_v32 = vld [vmem:[#allocation2 + $0x74] ss:$8 sps:$4 sm:$0xff]  }
  0x3f   :  { %v1185_v31 = vld [vmem:[#allocation2 + $0x60] ss:$8 sps:$4 sm:$0xff]   ;;  %v1188_v33 = vld [vmem:[#allocation2 + $0x70] ss:$8 sps:$4 sm:$0xff]   ;;  %v1191_v36 = vld [vmem:[#allocation5 + $0x4] ss:$8 sps:$4 sm:$0xff]  }
  0x40   :  { %362 = vmatpush1.bf16.msra.mxu0 %v1170_v13  ;;  %v1189_v35 = vld [vmem:[#allocation5] ss:$8 sps:$4 sm:$0xff]   ;;  %v1194_v37 = vld [vmem:[#allocation5 + $0x14] ss:$8 sps:$4 sm:$0xff]   ;;  %v1192_v38 = vld [vmem:[#allocation5 + $0x10] ss:$8 sps:$4 sm:$0xff]  }
  0x41   :  { %1110 = vmatpush3.bf16.msra.mxu1 %v1160_v3  ;;  %363 = vmatprep.subr.bf16.mxu0 %v1171_v14  ;;  %v1197_v39 = vld [vmem:[#allocation5 + $0x24] ss:$8 sps:$4 sm:$0xff]   ;;  %v1195_v40 = vld [vmem:[#allocation5 + $0x20] ss:$8 sps:$4 sm:$0xff]   ;;  %v1200_v41 = vld [vmem:[#allocation5 + $0x34] ss:$8 sps:$4 sm:$0xff]  }
  0x42   :  { %1115 = vmatprep.subr.bf16.mxu1 %v1364_v0  ;;  %v1198_v42 = vld [vmem:[#allocation5 + $0x30] ss:$8 sps:$4 sm:$0xff]   ;;  %v1203_v43 = vld [vmem:[#allocation5 + $0x44] ss:$8 sps:$4 sm:$0xff]   ;;  %v1201_v44 = vld [vmem:[#allocation5 + $0x40] ss:$8 sps:$4 sm:$0xff]  }
  0x43   :  { %v1206_v45 = vld [vmem:[#allocation5 + $0x54] ss:$8 sps:$4 sm:$0xff]   ;;  %v1204_v46 = vld [vmem:[#allocation5 + $0x50] ss:$8 sps:$4 sm:$0xff]   ;;  %v1209_v47 = vld [vmem:[#allocation5 + $0x64] ss:$8 sps:$4 sm:$0xff]  }
  0x44   :  { %1112 = vmatmul.mubr.msk.bf16.vlgmr.msra.gmra.mrb[0].mxu1 %vm120_vm1, %v88_v6  ;;  %364 = vmatpush1.bf16.msra.mxu0 %v1173_v15  ;;  %v1207_v48 = vld [vmem:[#allocation5 + $0x60] ss:$8 sps:$4 sm:$0xff]   ;;  %v1212_v49 = vld [vmem:[#allocation5 + $0x74] ss:$8 sps:$4 sm:$0xff]   ;;  %v1210_v50 = vld [vmem:[#allocation5 + $0x70] ss:$8 sps:$4 sm:$0xff]  }
  0x45   :  { %1116 = vmatpush3.bf16.msra.mxu1 %v1161_v5  ;;  %1123 = vmatprep.mubr.msk.bf16.mxu1 %vm1365_vm0, %v1364_v0  ;;  %v1215_v51 = vld [vmem:[#allocation5 + $0x84] ss:$8 sps:$4 sm:$0xff]   ;;  %v1213_v52 = vld [vmem:[#allocation5 + $0x80] ss:$8 sps:$4 sm:$0xff]   ;;  %v1218_v53 = vld [vmem:[#allocation5 + $0x94] ss:$8 sps:$4 sm:$0xff]  }
  0x46   :  { %1117 = vmatprep.subr.bf16.mxu1 %v1364_v0  ;;  %365 = vmatprep.subr.bf16.mxu0 %v1174_v16  ;;  %v1216_v54 = vld [vmem:[#allocation5 + $0x90] ss:$8 sps:$4 sm:$0xff]   ;;  %v1221_v55 = vld [vmem:[#allocation5 + $0xa4] ss:$8 sps:$4 sm:$0xff]   ;;  %v1219_v56 = vld [vmem:[#allocation5 + $0xa0] ss:$8 sps:$4 sm:$0xff]  }
  0x47   :  { %v1224_v57 = vld [vmem:[#allocation5 + $0xb4] ss:$8 sps:$4 sm:$0xff]   ;;  %v1222_v58 = vld [vmem:[#allocation5 + $0xb0] ss:$8 sps:$4 sm:$0xff]   ;;  %v1227_v59 = vld [vmem:[#allocation5 + $0xc4] ss:$8 sps:$4 sm:$0xff]  }
  0x48   :  { %366 = vmatpush1.bf16.msra.mxu0 %v1176_v17  ;;  %v1225_v60 = vld [vmem:[#allocation5 + $0xc0] ss:$8 sps:$4 sm:$0xff]   ;;  %v1230_v61 = vld [vmem:[#allocation5 + $0xd4] ss:$8 sps:$4 sm:$0xff]   ;;  %v1228_v62 = vld [vmem:[#allocation5 + $0xd0] ss:$8 sps:$4 sm:$0xff]  }
  0x49   :  { %1118 = vmatpush3.bf16.msra.mxu1 %v1162_v7  ;;  %367 = vmatprep.subr.bf16.mxu0 %v1177_v18  ;;  %v985_v63 = vld [vmem:[%s1586_s4] ss:$0 sm:$0xff]  ;;  %v1236_v10 = vld [vmem:[#allocation5 + $0xf4] ss:$8 sps:$4 sm:$0xff]   ;;  %v1234_v11 = vld [vmem:[#allocation5 + $0xf0] ss:$8 sps:$4 sm:$0xff]  }
  0x4a   :  { %1119 = vmatprep.subr.bf16.mxu1 %v1364_v0  ;;  %v1237_v12 = vld [vmem:[#allocation7 + $0x40] sm:$0xff]   ;;  %v1239_v14 = vld [vmem:[#allocation7 + $0x48] sm:$0xff]   ;;  %v1241_v16 = vld [vmem:[#allocation7 + $0x50] sm:$0xff]  }
  0x4b   :  { %v1238_v13 = vld [vmem:[#allocation7] sm:$0xff]   ;;  %v1240_v15 = vld [vmem:[#allocation7 + $0x8] sm:$0xff]   ;;  %v1242_v17 = vld [vmem:[#allocation7 + $0x10] sm:$0xff]  }
  0x4c   :  { %368 = vmatpush1.bf16.msra.mxu0 %v1179_v19  ;;  %v1243_v18 = vld [vmem:[#allocation7 + $0x58] sm:$0xff]  }
  0x4d   :  { %1120 = vmatpush3.bf16.msra.mxu1 %v1163_v8  ;;  %369 = vmatprep.subr.bf16.mxu0 %v1180_v20  ;;  %v1233_v8 = vld [vmem:[#allocation5 + $0xe4] ss:$8 sps:$4 sm:$0xff]   ;;  %v1244_v19 = vld [vmem:[#allocation7 + $0x18] sm:$0xff]  }
  0x4e   :  { %1121 = vmatprep.subr.bf16.mxu1 %v1364_v0  ;;  %v1245_v20 = vld [vmem:[#allocation7 + $0x60] sm:$0xff]  }
  0x50   :  { %370 = vmatpush1.bf16.msra.mxu0 %v1182_v21  ;;  %v1246_v21 = vld [vmem:[#allocation7 + $0x20] sm:$0xff]  }
  0x51   :  { %1122 = vmatpush3.bf16.msra.mxu1 %v1164_v9  ;;  %371 = vmatprep.subr.bf16.mxu0 %v1183_v22  ;;  %v1231_v9 = vld [vmem:[#allocation5 + $0xe0] ss:$8 sps:$4 sm:$0xff]  }
  0x52   :  { %608 = vmatprep.subr.bf16.mxu1 %v1191_v36  ;;  %v1247_v22 = vld [vmem:[#allocation7 + $0x68] sm:$0xff]  }
  0x54   :  { %372 = vmatpush1.bf16.msra.mxu0 %v1185_v31 }
  0x55   :  { %373 = vmatprep.subr.bf16.mxu0 %v1186_v32 }
  0x58   :  { %374 = vmatpush1.bf16.msra.mxu0 %v1188_v33 }
  0x59   :  { %1074 = vmatprep.subr.bf16.mxu0 %v1237_v12  ;;  %v1056_v12 = vld [vmem:[%s1594_s12] ss:$0 sm:$0xff] }
 0x117   :  { %v158_v24 = vpop.f32.mrb[0].mxu1 }
 0x118   :  { %v159_v25 = vadd.f32 %v980_v23, %v158_v24  ;;  %v1113_v26 = vpop.f32.mrb[1].mxu1  ;;  %v1248_v23 = vld [vmem:[#allocation7 + $0x28] sm:$0xff]   ;;  %v269_v24 = vlaneseq }
 0x119   :  { %v161_v27 = vpop.f32.mrb[2].mxu1 }
 0x11a   :  { %v164_v28 = vmax.f32 %v159_v25, 0.0  ;;  %v1114_v29 = vpop.f32.mrb[3].mxu1  ;;  %v270_v25 = vshrl.u32 %v269_v24, 7  ;;  %v267_v27 = vld [vmem:[%s1588_s6] sm:$0x3] }
 0x11c   :  { %v165_v30 = vpack.c.bf16 %v164_v28, %v164_v28  ;;  %v271_v26 = vsub.s32 0, %v270_v25  ;;  %v275_v28 = vsub.s32 1, %v270_v25 }
 0x11e   :  { %1124 = vmatmul.mubr.msk.bf16.vlgmr.msra.gmra.mrb[4].mxu1 %vm205_vm2, %v165_v30  ;;  %v272_v29 = vrot.slane %v267_v27, %v271_v26  ;;  %v276_v30 = vrot.slane %v267_v27, %v275_v28 }
 0x11f   :  { %609 = vmatpush1.bf16.msra.mxu1 %v1189_v35 }
 0x120   :  { %610 = vmatprep.subr.bf16.mxu1 %v1194_v37 }
 0x123   :  { %611 = vmatpush1.bf16.msra.mxu1 %v1192_v38 }
 0x124   :  { %612 = vmatprep.subr.bf16.mxu1 %v1197_v39 }
 0x127   :  { %613 = vmatpush1.bf16.msra.mxu1 %v1195_v40 }
 0x128   :  { %614 = vmatprep.subr.bf16.mxu1 %v1200_v41  ;;  %v1249_v41 = vld [vmem:[#allocation7 + $0x70] sm:$0xff]  }
 0x12b   :  { %615 = vmatpush1.bf16.msra.mxu1 %v1198_v42  ;;  %v1250_v42 = vld [vmem:[#allocation7 + $0x30] sm:$0xff]  }
 0x12c   :  { %616 = vmatprep.subr.bf16.mxu1 %v1203_v43  ;;  %v1251_v43 = vld [vmem:[#allocation7 + $0x78] sm:$0xff]  }
 0x12f   :  { %617 = vmatpush1.bf16.msra.mxu1 %v1201_v44  ;;  %v1252_v44 = vld [vmem:[#allocation7 + $0x38] sm:$0xff]  }
 0x130   :  { %618 = vmatprep.subr.bf16.mxu1 %v1206_v45  ;;  %v436_v45 = vld [vmem:[%s1590_s8] sm:$0x3] }
 0x133   :  { %619 = vmatpush1.bf16.msra.mxu1 %v1204_v46  ;;  %v441_v46 = vrot.slane %v436_v45, %v271_v26 }
 0x134   :  { %620 = vmatprep.subr.bf16.mxu1 %v1209_v47  ;;  %v445_v47 = vrot.slane %v436_v45, %v275_v28 }
 0x137   :  { %621 = vmatpush1.bf16.msra.mxu1 %v1207_v48 }
 0x138   :  { %622 = vmatprep.subr.bf16.mxu1 %v1212_v49 }
 0x13b   :  { %623 = vmatpush1.bf16.msra.mxu1 %v1210_v50 }
 0x13c   :  { %624 = vmatprep.subr.bf16.mxu1 %v1215_v51 }
 0x13f   :  { %625 = vmatpush1.bf16.msra.mxu1 %v1213_v52 }
 0x140   :  { %626 = vmatprep.subr.bf16.mxu1 %v1218_v53 }
 0x143   :  { %627 = vmatpush1.bf16.msra.mxu1 %v1216_v54 }
 0x144   :  { %628 = vmatprep.subr.bf16.mxu1 %v1221_v55 }
 0x147   :  { %629 = vmatpush1.bf16.msra.mxu1 %v1219_v56 }
 0x148   :  { %630 = vmatprep.subr.bf16.mxu1 %v1224_v57  ;;  %v1253_v57 = vld [vmem:[%s1593_s11] sm:$0xff]  }
 0x14b   :  { %631 = vmatpush1.bf16.msra.mxu1 %v1222_v58 }
 0x14c   :  { %632 = vmatprep.subr.bf16.mxu1 %v1227_v59  ;;  %v1254_v59 = vld [vmem:[%s1593_s11 + $0x8] sm:$0xff]  }
 0x14f   :  { %633 = vmatpush1.bf16.msra.mxu1 %v1225_v60  ;;  %v1255_v60 = vld [vmem:[%s1593_s11 + $0x10] sm:$0xff]  }
 0x150   :  { %634 = vmatprep.subr.bf16.mxu1 %v1230_v61  ;;  %v1256_v61 = vld [vmem:[%s1593_s11 + $0x18] sm:$0xff]  }
 0x153   :  { %635 = vmatpush1.bf16.msra.mxu1 %v1228_v62  ;;  %v1257_v62 = vld [vmem:[%s1593_s11 + $0x20] sm:$0xff]  }
 0x154   :  { %636 = vmatprep.subr.bf16.mxu1 %v1233_v8 }
 0x157   :  { %637 = vmatpush1.bf16.msra.mxu1 %v1231_v9 }
 0x158   :  { %638 = vmatprep.subr.bf16.mxu1 %v1236_v10 }
 0x15b   :  { %639 = vmatpush1.bf16.msra.mxu1 %v1234_v11 }
 0x1f1   :  { %v243_v1 = vpop.f32.mrb[4].mxu1 }
 0x1f2   :  { %v244_v2 = vadd.f32 %v985_v63, %v243_v1  ;;  %v1125_v3 = vpop.f32.mrb[5].mxu1  ;;  %v1258_v63 = vld [vmem:[%s1593_s11 + $0x28] sm:$0xff]   ;;  %v1259_v1 = vld [vmem:[%s1593_s11 + $0x30] sm:$0xff]  }
 0x1f3   :  { %v246_v4 = vpop.f32.mrb[6].mxu1 }
 0x1f4   :  { %v249_v5 = vmax.f32 %v244_v2, 0.0  ;;  %v1126_v6 = vpop.f32.mrb[7].mxu1  ;;  %v1260_v2 = vld [vmem:[%s1593_s11 + $0x38] sm:$0xff]   ;;  %v1039_v4 = vld [vmem:[%s1592_s10] ss:$0 sm:$0xff]  ;;  %s1367_s10 = smov [#allocation8]  }
 0x1f5   :  { %s970_s11 = sshll.u32 %s1367_s10, 4  ;;  %s971_s11 = int_to_ptr.vmem [resolvable:$true] %s970_s11 }
 0x1f6   :  { %v250_v7 = vpack.c.bf16 %v249_v5, %v249_v5  ;;  %s1329_s12 = scalar_lea.vmem %s971_s11, 128  ;;  %p1334_p11 = scmp.lt.s32.totalorder %s971_s11, %s971_s11 }
 0x1f7   :  { %p1330_p10 = scmp.ne.s32.totalorder %s971_s11, %s1329_s12  ;;  %p1335_p12 = scmp.lt.s32.totalorder %s1329_s12, %s1329_s12 }
 0x1f8   :  { %392 = vmatmul.mubr.bf16.vlgmr.msra.gmra.mrb[0].mxu0 %v250_v7 }
 0x1f9   :  { %1075 = vmatpush3.bf16.msra.mxu0 %v1238_v13  ;;  %p1336_p13 = por %p1335_p12, %p1334_p11 }
 0x1fa   :  { %1076 = vmatprep.subr.bf16.mxu0 %v1239_v14 }
 0x1fb   :  { %p1337_p0 = pnand %p1336_p13, %p1330_p10 }
 0x1fd   :  { %1077 = vmatpush3.bf16.msra.mxu0 %v1240_v15 }
 0x1fe   :  { %1078 = vmatprep.subr.bf16.mxu0 %v1241_v16 }
 0x201   :  { %1079 = vmatpush3.bf16.msra.mxu0 %v1242_v17 }
 0x202   :  { %1080 = vmatprep.subr.bf16.mxu0 %v1243_v18 }
 0x205   :  { %1081 = vmatpush3.bf16.msra.mxu0 %v1244_v19 }
 0x206   :  { %1082 = vmatprep.subr.bf16.mxu0 %v1245_v20 }
 0x209   :  { %1083 = vmatpush3.bf16.msra.mxu0 %v1246_v21 }
 0x20a   :  { %1084 = vmatprep.subr.bf16.mxu0 %v1247_v22 }
 0x20d   :  { %1085 = vmatpush3.bf16.msra.mxu0 %v1248_v23 }
 0x20e   :  { %1086 = vmatprep.subr.bf16.mxu0 %v1249_v41 }
 0x211   :  { %1087 = vmatpush3.bf16.msra.mxu0 %v1250_v42 }
 0x212   :  { %1088 = vmatprep.subr.bf16.mxu0 %v1251_v43 }
 0x215   :  { %1089 = vmatpush3.bf16.msra.mxu0 %v1252_v44 }
 0x216   :  { %1127 = vmatprep.subr.bf16.mxu0 %v1364_v0 }
 0x2cb   :  { %v393_v31 = vpop.f32.mrb[0].mxu0 }
 0x2cc   :  { %v394_v32 = vadd.f32 %v393_v31, %v272_v29  ;;  %v395_v33 = vpop.f32.mrb[1].mxu0 }
 0x2cd   :  { %v396_v34 = vadd.f32 %v395_v33, %v276_v30  ;;  %v397_v35 = vpop.f32.mrb[2].mxu0 }
 0x2ce   :  { %v400_v36 = vmax.f32 %v394_v32, 0.0  ;;  %v398_v37 = vpop.f32.mrb[3].mxu0 }
 0x2cf   :  { %v401_v38 = vmax.f32 %v396_v34, 0.0 }
 0x2d0   :  { %v402_v40 = vpack.c.bf16 %v400_v36, %v400_v36 }
 0x2d1   :  { %v403_v39 = vpack.c.bf16 %v401_v38, %v401_v38 }
 0x2d3   :  { %640 = vmatprep.mubr.bf16.mxu1 %v403_v39 }
 0x2d4   :  { %641 = vmatmul.mubr.bf16.vlgmr.msra.gmra.mrb[8].mxu1 %v402_v40 }
 0x3a7   :  { %v642_v48 = vpop.f32.mrb[8].mxu1 }
 0x3a8   :  { %v643_v49 = vadd.f32 %v642_v48, %v441_v46  ;;  %v644_v50 = vpop.f32.mrb[9].mxu1 }
 0x3a9   :  { %v645_v51 = vadd.f32 %v644_v50, %v445_v47  ;;  %v646_v52 = vpop.f32.mrb[10].mxu1 }
 0x3aa   :  { %v649_v53 = vmax.f32 %v643_v49, 0.0  ;;  %v647_v54 = vpop.f32.mrb[11].mxu1 }
 0x3ab   :  { %v650_v55 = vmax.f32 %v645_v51, 0.0 }
 0x3ac   :  { %v651_v58 = vpack.c.bf16 %v649_v53, %v649_v53 }
 0x3ad   :  { %v652_v56 = vpack.c.bf16 %v650_v55, %v650_v55 }
 0x3af   :  { %820 = vmatprep.mubr.bf16.mxu0 %v652_v56 }
 0x3b0   :  { %821 = vmatmul.mubr.bf16.vlgmr.msra.gmra.mrb[4].mxu0 %v651_v58 }
 0x3b1   :  { %1128 = vmatpush3.bf16.msra.mxu0 %v1253_v57  ;;  %1143 = vmatprep.mubr.msk.bf16.mxu0 %vm1365_vm0, %v1364_v0 }
 0x3b2   :  { %1129 = vmatprep.subr.bf16.mxu0 %v1364_v0 }
 0x3b5   :  { %1130 = vmatpush3.bf16.msra.mxu0 %v1254_v59 }
 0x3b6   :  { %1131 = vmatprep.subr.bf16.mxu0 %v1364_v0 }
 0x3b9   :  { %1132 = vmatpush3.bf16.msra.mxu0 %v1255_v60 }
 0x3ba   :  { %1133 = vmatprep.subr.bf16.mxu0 %v1364_v0 }
 0x3bd   :  { %1134 = vmatpush3.bf16.msra.mxu0 %v1256_v61 }
 0x3be   :  { %1135 = vmatprep.subr.bf16.mxu0 %v1364_v0 }
 0x3c1   :  { %1136 = vmatpush3.bf16.msra.mxu0 %v1257_v62 }
 0x3c2   :  { %1137 = vmatprep.subr.bf16.mxu0 %v1364_v0 }
 0x3c5   :  { %1138 = vmatpush3.bf16.msra.mxu0 %v1258_v63 }
 0x3c6   :  { %1139 = vmatprep.subr.bf16.mxu0 %v1364_v0 }
 0x3c9   :  { %1140 = vmatpush3.bf16.msra.mxu0 %v1259_v1 }
 0x3ca   :  { %1141 = vmatprep.subr.bf16.mxu0 %v1364_v0  ;;  %v942_v0 = vand.u32 127, %v269_v24 }
 0x3cc   :  { %v947_v13 = vand.u32 1, %v942_v0 }
 0x3cd   :  { %1142 = vmatpush3.bf16.msra.mxu0 %v1260_v2 }
 0x3ce   :  { %vm955_vm3 = vcmp.eq.s32.totalorder %v947_v13, 0 }
 0x483   :  { %v1090_v3 = vpop.f32.mrb[4].mxu0 }
 0x484   :  { %v1091_v5 = vpop.f32.mrb[5].mxu0 }
 0x485   :  { %v1092_v6 = vadd.f32 %v1091_v5, %v1090_v3  ;;  %v1093_v7 = vpop.f32.mrb[6].mxu0 }
 0x486   :  { %v1094_v8 = vpop.f32.mrb[7].mxu0 }
 0x487   :  { %v823_v9 = vadd.f32 %v1092_v6, %v1039_v4 }
 0x489   :  { %v828_v10 = vmax.f32 %v823_v9, 0.0 }
 0x48b   :  { %v829_v11 = vpack.c.bf16 %v828_v10, %v828_v10 }
 0x48d   :  { %1144 = vmatmul.mubr.bf16.vlgmr.msra.gmra.mrb[8].mxu0 %v829_v11 }
 0x560   :  { %v935_v14 = vpop.f32.mrb[8].mxu0 }
 0x561   :  { %v936_v15 = vadd.f32 %v1056_v12, %v935_v14  ;;  %v1145_v16 = vpop.f32.mrb[9].mxu0 }
 0x562   :  { %v938_v17 = vpop.f32.mrb[10].mxu0 }
 0x563   :  { %v956_v18 = vmul.f32 0.5, %v936_v15  ;;  %v1146_v19 = vpop.f32.mrb[11].mxu0 }
 0x565   :  { %v957_v20 = vsel %vm955_vm3, %v956_v18, %v936_v15 }
 0x566   :  { %1261 = vtanh.f32 %v957_v20 }
 0x570   :  { %v1262_v21 = vpop.eup %1261 }
 0x571   :  { %v959_v22 = vmul.f32 0.5, %v1262_v21 }
 0x573   :  { %v960_v23 = vadd.f32 0.5, %v959_v22 }
 0x575   :  { %v961_v24 = vsel %vm955_vm3, %v960_v23, %v1262_v21 }
 0x576   :  { %963 = vst.msk [vmem:[#allocation8] sm:$0xff] %vm962_vm4, %v961_v24 }
 0x577   :  { %1340 = shalt.err (!%p1337_p0)
}
 0x578   :  { %s1341_s30 = scalar_lea.hbm %s1595_s13, 128 }
 0x579   :  { %p1342_p1 = scmp.ne.s32.totalorder %s1595_s13, %s1341_s30  ;;  %p1345_p2 = scmp.lt.u32.totalorder %s1341_s30, %s1595_s13 }
 0x57b   :  { %p1347_p3 = pnand %p1345_p2, %p1342_p1 }
 0x57d   :  { %1350 = shalt.err (!%p1347_p3)
}
 0x57e   :  { %973 = dma.vmem_to_hbm [thread:$0]  %s971_s11, 128, %s1595_s13, [#allocation4]  }
 0x57f   :  { %1355 = dma.done.wait [#allocation4], 128  }
 0x580   :  { %1356 = vsyncadd [#allocation4], 4294967168 }
 0x581   :  { %977 = vsyncpa [#allocation3], 1 }
 0x582   :  { %978 = vsyncpa [#allocation6], 1 }
 0x583   :  { %979 = vsyncpa [#allocation4], 1 }

</bundles_post_ra>
